<compile_context>
chip_gen: v5e
topology: v5e:2x2
jax: 0.10.0
libtpu: 0.0.40
codegen_flags: <defaults>
</compile_context>

<pallas_src>
import jax
import jax.numpy as jnp
from jax.experimental import pallas as pl
from jax.experimental.pallas import tpu as pltpu


def _self_output_kernel(h_ref, wt_ref, p_ref, res_ref, out_ref):
    # h_ref:   (TM, H)  activation tile (input dtype)
    # wt_ref:  (H, H)   dense weight, transposed & gamma-folded (input dtype)
    # p_ref:   (2, H)   f32 params: row 0 = fused bias (b*gamma + beta), row 1 = gamma
    # res_ref: (TM, H)  residual tile (input dtype)
    # out_ref: (TM, H)
    y = jnp.dot(h_ref[...], wt_ref[...], preferred_element_type=jnp.float32)
    b_fused = p_ref[0:1, :]      # (1, H) f32, broadcasts over rows
    gamma = p_ref[1:2, :]        # (1, H) f32
    y = y + b_fused + res_ref[...].astype(jnp.float32) * gamma
    out_ref[...] = y.astype(out_ref.dtype)


def mobilebert_self_output(hidden_states, residual, w_dense, b_dense, gamma, beta,
                           *, tile_m=None):
    """hidden_states, residual: [B, S, H]; w_dense: [H, H] (PyTorch (out, in));
    b_dense, gamma, beta: [H].  tile_m: row tile (rounded to a sublane multiple);
    defaults to 2048 (f32) / 4096 (bf16)."""
    B, S, H = hidden_states.shape
    dtype = hidden_states.dtype
    itemsize = jnp.dtype(dtype).itemsize
    M = B * S

    # Sublane alignment: 8 rows for 32-bit dtypes, 16 for 16-bit dtypes.
    sub = 16 if itemsize == 2 else 8
    if tile_m is None:
        tile_m = 4096 if itemsize == 2 else 2048
    tile_m = max(sub, (int(tile_m) // sub) * sub)
    # Never exceed the (sublane-rounded) row count.
    rows_rounded = ((M + sub - 1) // sub) * sub
    tile_m = min(tile_m, rows_rounded)
    # Keep at least 2 grid steps when there is enough work so that the
    # "parallel" row axis splits across both TensorCores on v7x (harmless on
    # single-TC v5e/v6e: one extra ~0.35 us step).
    if M > sub:
        half_rounded = ((-(-M // 2) + sub - 1) // sub) * sub
        tile_m = min(tile_m, max(sub, half_rounded))

    grid_m = pl.cdiv(M, tile_m)

    h2d = hidden_states.reshape(M, H)
    r2d = residual.reshape(M, H)

    # Static parameter fold (one-time, on weights — NOT per-call activation math):
    #   (h @ W^T + b + res) * gamma + beta
    # = h @ (W^T * gamma) + (b * gamma + beta) + res * gamma
    gamma_f32 = gamma.astype(jnp.float32)
    wt_fused = (w_dense.T.astype(jnp.float32) * gamma_f32[None, :]).astype(dtype)
    b_fused = b_dense.astype(jnp.float32) * gamma_f32 + beta.astype(jnp.float32)
    params = jnp.stack([b_fused, gamma_f32], axis=0)   # (2, H) f32, resident

    cost = pl.CostEstimate(
        flops=2 * M * H * H,
        transcendentals=0,
        bytes_accessed=3 * M * H * itemsize + H * H * itemsize + 2 * H * 4,
    )

    # Rough double-buffered VMEM footprint; only raise the scoped limit when the
    # defaults (16 MiB v5e / 32 MiB v6e,v7x) might be tight.
    vmem_bytes = (2 * 3 * tile_m * H * itemsize      # h, res, out (double buffered)
                  + 2 * H * H * itemsize             # resident weight
                  + 2 * 2 * H * 4)                   # resident params
    cp_kwargs = dict(dimension_semantics=("parallel",))   # megacore-shard rows
    if vmem_bytes > (12 << 20):
        cp_kwargs["vmem_limit_bytes"] = min(vmem_bytes + (4 << 20), 96 << 20)

    out = pl.pallas_call(
        _self_output_kernel,
        out_shape=jax.ShapeDtypeStruct((M, H), dtype),
        grid_spec=pltpu.PrefetchScalarGridSpec(
            num_scalar_prefetch=0,
            grid=(grid_m,),
            in_specs=[
                pl.BlockSpec((tile_m, H), lambda i: (i, 0)),   # activation tile
                # Constant index_map (0,0): Pallas keeps these resident, no re-DMA.
                pl.BlockSpec((H, H), lambda i: (0, 0)),        # fused weight
                pl.BlockSpec((2, H), lambda i: (0, 0)),        # fused bias + gamma (f32)
                pl.BlockSpec((tile_m, H), lambda i: (i, 0)),   # residual tile
            ],
            out_specs=pl.BlockSpec((tile_m, H), lambda i: (i, 0)),
        ),
        compiler_params=pltpu.CompilerParams(**cp_kwargs),
        cost_estimate=cost,
    )(h2d, wt_fused, params, r2d)

    return out.reshape(B, S, H)


def _reference(hidden_states, residual, w_dense, b_dense, gamma, beta):
    y = jnp.einsum("bsh,oh->bso", hidden_states, w_dense) + b_dense
    y = y + residual
    return y * gamma + beta


if __name__ == "__main__":
    # Small MobileBERT-like shapes: batch=2, seq=8, true_hidden_size=128.
    B, S, H = 2, 8, 128
    key = jax.random.PRNGKey(0)
    k1, k2, k3, k4, k5, k6, k7, k8 = jax.random.split(key, 8)

    hidden_states = jax.random.normal(k1, (B, S, H), dtype=jnp.float32)
    residual = jax.random.normal(k2, (B, S, H), dtype=jnp.float32)

    # Synthetic parameters matching nn.Linear / NoNorm shapes (non-trivial
    # gamma/beta so the gamma-fold is actually exercised).
    w_dense = jax.random.normal(k3, (H, H), dtype=jnp.float32) * 0.02   # (out, in)
    b_dense = jax.random.normal(k4, (H,), dtype=jnp.float32) * 0.02
    gamma = 1.0 + 0.1 * jax.random.normal(k5, (H,), dtype=jnp.float32)
    beta = 0.1 * jax.random.normal(k6, (H,), dtype=jnp.float32)

    # --- f32 (small M -> tile clamps, 2 grid steps) ---
    out = mobilebert_self_output(hidden_states, residual, w_dense, b_dense, gamma, beta)
    out = jax.block_until_ready(out)
    ref = _reference(hidden_states, residual, w_dense, b_dense, gamma, beta)
    assert out.shape == (B, S, H)
    assert jnp.allclose(out, ref, atol=1e-4, rtol=1e-4)

    # --- f32, multi-tile path with ragged last block (M=400 rows, tile_m=128 ->
    #     grid=(4,), last block only 16 valid rows; no wrapper pad/slice) ---
    B2, S2 = 2, 200
    h2 = jax.random.normal(k7, (B2, S2, H), dtype=jnp.float32)
    r2 = jax.random.normal(k8, (B2, S2, H), dtype=jnp.float32)
    out2 = mobilebert_self_output(h2, r2, w_dense, b_dense, gamma, beta, tile_m=128)
    out2 = jax.block_until_ready(out2)
    ref2 = _reference(h2, r2, w_dense, b_dense, gamma, beta)
    assert out2.shape == (B2, S2, H)
    assert jnp.allclose(out2, ref2, atol=1e-4, rtol=1e-4)

    # --- bf16 activations/weights (preferred inference path: halves HBM traffic;
    #     f32 MXU accumulation + f32 epilogue) ---
    out_bf16 = mobilebert_self_output(
        hidden_states.astype(jnp.bfloat16), residual.astype(jnp.bfloat16),
        w_dense.astype(jnp.bfloat16), b_dense, gamma, beta)
    out_bf16 = jax.block_until_ready(out_bf16)
    assert out_bf16.dtype == jnp.bfloat16
    assert jnp.allclose(out_bf16.astype(jnp.float32), ref, atol=5e-2, rtol=5e-2)

    # TODO(synk): dropout path (use_bottleneck=False) and LayerNorm
    # (normalization_type='layer_norm') are not implemented; this kernel covers
    # MobileBERT's default use_bottleneck=True / 'no_norm' forward only.
    print("KERNEL_OK")
</pallas_src>

<mosaic_0001>
module attributes {stable_mosaic.version = 11 : i64} {
  func.func @_self_output_kernel(%arg0: i32, %arg1: memref<8x128xf32, #tpu.memory_space<vmem>>, %arg2: memref<128x128xf32, #tpu.memory_space<vmem>>, %arg3: memref<2x128xf32, #tpu.memory_space<vmem>>, %arg4: memref<8x128xf32, #tpu.memory_space<vmem>>, %arg5: memref<8x128xf32, #tpu.memory_space<vmem>>) attributes {dimension_semantics = [#tpu.dimension_semantics<parallel>], iteration_bounds = array<i64: 2>, scalar_prefetch = 0 : i64, scratch_operands = 0 : i64, tpu.core_type = #tpu.core_type<tc>, window_params = [{transform_indices = @transform_0, window_bounds = array<i64: 8, 128>}, {pipeline_mode = #tpu.pipeline_mode<synchronous>, transform_indices = @transform_1, window_bounds = array<i64: 128, 128>}, {pipeline_mode = #tpu.pipeline_mode<synchronous>, transform_indices = @transform_2, window_bounds = array<i64: 2, 128>}, {transform_indices = @transform_3, window_bounds = array<i64: 8, 128>}, {transform_indices = @transform_4, window_bounds = array<i64: 8, 128>}]} {
    %c0 = arith.constant 0 : index
    %c0_0 = arith.constant 0 : index
    %0 = vector.load %arg1[%c0, %c0_0] : memref<8x128xf32, #tpu.memory_space<vmem>>, vector<8x128xf32>
    %c0_1 = arith.constant 0 : index
    %c0_2 = arith.constant 0 : index
    %1 = vector.load %arg2[%c0_1, %c0_2] : memref<128x128xf32, #tpu.memory_space<vmem>>, vector<128x128xf32>
    %cst = arith.constant dense<0.000000e+00> : vector<8x128xf32>
    %2 = tpu.matmul %0, %1, %cst {dimension_numbers = #tpu.dot_dimension_numbers<[1], [0], [0], [1], [0, 0, 1, 1], [], []>} : vector<8x128xf32>, vector<128x128xf32>, vector<8x128xf32> -> vector<8x128xf32>
    %c0_3 = arith.constant 0 : index
    %c0_4 = arith.constant 0 : index
    %3 = vector.load %arg3[%c0_3, %c0_4] : memref<2x128xf32, #tpu.memory_space<vmem>>, vector<1x128xf32>
    %c1 = arith.constant 1 : index
    %c0_5 = arith.constant 0 : index
    %4 = vector.load %arg3[%c1, %c0_5] : memref<2x128xf32, #tpu.memory_space<vmem>>, vector<1x128xf32>
    %5 = vector.broadcast %3 : vector<1x128xf32> to vector<8x128xf32>
    %6 = arith.addf %2, %5 : vector<8x128xf32>
    %c0_6 = arith.constant 0 : index
    %c0_7 = arith.constant 0 : index
    %7 = vector.load %arg4[%c0_6, %c0_7] : memref<8x128xf32, #tpu.memory_space<vmem>>, vector<8x128xf32>
    %8 = vector.broadcast %4 : vector<1x128xf32> to vector<8x128xf32>
    %9 = arith.mulf %7, %8 : vector<8x128xf32>
    %10 = arith.addf %6, %9 : vector<8x128xf32>
    %c0_8 = arith.constant 0 : index
    %c0_9 = arith.constant 0 : index
    %11 = vector.load %arg5[%c0_8, %c0_9] : memref<8x128xf32, #tpu.memory_space<vmem>>, vector<8x128xf32>
    tpu.vector_store %arg5[%c0_8, %c0_9], %10 {strides = array<i32>} : memref<8x128xf32, #tpu.memory_space<vmem>>, vector<8x128xf32>,
    return
  }
  func.func @transform_0(%arg0: i32) -> (i32, i32) {
    %c0_i32 = arith.constant 0 : i32
    %c0_i32_0 = arith.constant 0 : i32
    return %arg0, %c0_i32 : i32, i32
  }
  func.func @transform_1(%arg0: i32) -> (i32, i32) {
    %c0_i32 = arith.constant 0 : i32
    %c0_i32_0 = arith.constant 0 : i32
    %c0_i32_1 = arith.constant 0 : i32
    return %c0_i32, %c0_i32_0 : i32, i32
  }
  func.func @transform_2(%arg0: i32) -> (i32, i32) {
    %c0_i32 = arith.constant 0 : i32
    %c0_i32_0 = arith.constant 0 : i32
    %c0_i32_1 = arith.constant 0 : i32
    return %c0_i32, %c0_i32_0 : i32, i32
  }
  func.func @transform_3(%arg0: i32) -> (i32, i32) {
    %c0_i32 = arith.constant 0 : i32
    %c0_i32_0 = arith.constant 0 : i32
    return %arg0, %c0_i32 : i32, i32
  }
  func.func @transform_4(%arg0: i32) -> (i32, i32) {
    %c0_i32 = arith.constant 0 : i32
    %c0_i32_0 = arith.constant 0 : i32
    return %arg0, %c0_i32 : i32, i32
  }
}

</mosaic_0001>

<bundles_post_ra>
// kernel: tpu_custom_call.1
= control target key start
LH: loop header
LB: loop body
LE: loop exit
PB: predicated region body
PF: predicated region fallthrough
CT: control target
= control target key end

     0   :  { %s959_s0 = inlined_call_operand.hbm [shape: f32[16,128], index: 0, kind: input, shape index: {}]   ;;  %s960_s1 = inlined_call_operand.hbm [shape: f32[128,128], index: 1, kind: input, shape index: {}]   ;;  %s961_s2 = inlined_call_operand.hbm [shape: f32[2,128], index: 2, kind: input, shape index: {}]   ;;  %s962_s3 = inlined_call_operand.hbm [shape: f32[16,128], index: 3, kind: input, shape index: {}]   ;;  %s963_s4 = inlined_call_operand.hbm [shape: f32[16,128], index: 4, kind: output, shape index: {}]  }
   0x1   :  { %964 = sst [smem:[#allocation16_spill]] %s960_s1 }
   0x2   :  { %965 = sst [smem:[#allocation17_spill]] %s961_s2 }
   0x3   :  { %9 = vsyncpa [#allocation3], 0 }
   0x4   :  { %11 = vsyncpa [#allocation3 + $0x1], 0 }
   0x5   :  { %12 = vsyncpa [#allocation6], 0 }
   0x6   :  { %13 = vsyncpa [#allocation9], 0 }
   0x7   :  { %15 = vsyncpa [#allocation9 + $0x1], 0 }
   0x8   :  { %16 = vsyncpa [#allocation4], 0 }
   0x9   :  { %18 = vsyncpa [#allocation4 + $0x1], 0  ;;  %s778_s15 = smov 0   ;;  %s780_s16 = smov 0  }
   0xa   :  { %s782_s17 = smov 0   ;;  %s784_s18 = smov 0  }
   0xb LB: > { %s966_s1 = sld [smem:[#allocation16_spill]]  ;;  %s802_s22 = sadd.s32 4294967295, %s747_s18   ;;  %s747_s18 = sphi %s784_s18, %s980_s18   ;;  %s743_s17 = sphi %s782_s17, %s979_s17   ;;  %s739_s16 = sphi %s780_s16, %s978_s16   ;;  %s735_s15 = sphi %s778_s15, %s977_s15  }
   0xc   : > { %p459_p0 = scmp.ge.s32.totalorder %s747_s18, 1  ;;  %p45_p1 = scmp.eq.s32.totalorder %s802_s22, 0 }
   0xd   : > { %p149_p2 = scmp.lt.s32.totalorder %s747_s18, 3  ;;  %s749_s24 = smov [#allocation5]  }
   0xe   : > { %s162_s25 = sshll.u32 %s749_s24, 4  ;;  %s968_s2 = sld [smem:[#allocation17_spill]]  ;;  %s163_s25 = int_to_ptr.vmem [resolvable:$true] %s162_s25 }
   0xf   : > { %p807_p3 = pnand %p459_p0, %p149_p2  ;;  %s750_s29 = smov [#allocation7]  }
  0x10   : > { %s177_s30 = sshll.u32 %s750_s29, 4  ;;  %s751_s5 = smov 128   ;;  %s178_s30 = int_to_ptr.vmem [resolvable:$true] %s177_s30 }
  0x11   : > { %s160_s21 = sshll.u32 %s966_s1, 4  ;;  %p491_p4 = pneg %p807_p3  ;;  %s161_s21 = int_to_ptr.hbm [resolvable:$true] %s160_s21 }
  0x12   : > { %s752_s6 = smov 8   ;;  %s458_s7 = sadd.s32 4294967294, %s747_s18  }
  0x13   : > { %p492_p6 = pnand %p491_p4, %p45_p1  ;;  %s821_s8 = sadd.s32 1, %s747_s18  }
  0x14   : > { %s175_s28 = sshll.u32 %s968_s2, 4  ;;  %s28_s9 = ssub.s32 %s747_s18, %s821_s8  ;;  %s176_s28 = int_to_ptr.hbm [resolvable:$true] %s175_s28 }
  0x15   : > { %494 = dma.hbm_to_vmem [thread:$0]  (!%p492_p6), %s161_s21, 2048, %s163_s25, [#allocation6], %s751_s5, %s751_s5, %s752_s6  }
  0x16   : > { %497 = dma.hbm_to_vmem [thread:$0]  (!%p492_p6), %s176_s28, 32, %s178_s30, [#allocation6]  }
  0x17   : > { %s31_s10 = sadd.s32 1, %s743_s17  ;;  %p29_p7 = scmp.eq.s32.totalorder %s28_s9, 0 }
  0x18   : > { %p38_p8 = scmp.ne.s32.totalorder %s743_s17, %s739_s16  ;;  %p39_p9 = scmp.eq.s32.totalorder %s747_s18, 0 }
  0x19   : > { %p44_p10 = scmp.ne.s32.totalorder %s739_s16, %s735_s15  ;;  %p136_p13 = scmp.eq.s32.totalorder %s802_s22, 1 }
  0x1a   : > { %s832_s11 = scalar_select %p29_p7, %s743_s17, %s31_s10  }
  0x1b   : > { %p834_p11 = por %p39_p9, %p38_p8  ;;  %p840_p12 = por %p45_p1, %p44_p10 }
  0x1c   : > { %969 = sst [smem:[#allocation15_spill]] %s832_s11  ;;  %p142_p0 = scmp.eq.s32.totalorder %s458_s7, 1 }
  0x1d   : > { %p511_p2 = scmp.lt.s32.totalorder %s747_s18, 2  ;;  %s847_s14 = sand.u32 1, %s743_s17  }
  0x1e   : > { %p849_p4 = por %p136_p13, %p38_p8  ;;  %p853_p6 = por %p142_p0, %p44_p10 }
  0x1f   : > { %s463_s21 = sshll.u32 %s847_s14, 3  ;;  %s464_s24 = sshll.u32 %s747_s18, 3 }
  0x20   : > { %s196_s27 = scalar_lea.hbm %s959_s0, %s464_s24  ;;  %s192_s28 = scalar_lea.vmem [#allocation2], %s463_s21 }
  0x21   : > { %s200_s29 = sshll.u32 %s192_s28, 4  ;;  %s198_s30 = sshll.u32 %s196_s27, 4  ;;  %s201_s29 = int_to_ptr.vmem [resolvable:$true] %s200_s29  ;;  %s199_s30 = int_to_ptr.hbm [resolvable:$true] %s198_s30 }
  0x22   : > { %p864_p7 = pnand %p511_p2, %p834_p11  ;;  %s215_s9 = scalar_lea.hbm %s962_s3, %s464_s24 }
  0x23   : > { %s189_s10 = scalar_lea.sflag [#allocation3], %s847_s14  ;;  %s613_s1 = sshra.s32 %s199_s30, 4  ;;  %s614_s1 = int_to_ptr.hbm [resolvable:$true] %s613_s1 }
  0x24   : > { %s615_s25 = scalar_lea.hbm %s614_s1, 8  ;;  %p617_p9 = pneg %p864_p7 }
  0x25   : > { %p616_p8 = scmp.ne.s32.totalorder %s614_s1, %s615_s25  ;;  %s620_s27 = scalar_lea.hbm %s959_s0, 16 }
  0x26   : > { %p621_p13 = scmp.lt.s32.totalorder %s614_s1, %s959_s0  ;;  %p622_p0 = scmp.lt.s32.totalorder %s620_s27, %s615_s25 }
  0x27   : > { %p618_p10 = pnand %p617_p9, %p616_p8 }
  0x28   : > { %p623_p2 = por %p622_p0, %p621_p13 }
  0x29   : > { %p619_p11 = pneg %p618_p10 }
  0x2b   : > { %p624_p5 = pnand %p623_p2, %p619_p11 }
  0x2d   : > { %627 = shalt.err (!%p624_p5)
}
  0x2e   : > { %501 = dma.hbm_to_vmem [thread:$0]  (!%p864_p7), %s199_s30, 128, %s201_s29, %s189_s10  }
  0x2f   : > { %s217_s24 = sshll.u32 %s215_s9, 4  ;;  %s211_s7 = scalar_lea.vmem [#allocation8], %s463_s21  ;;  %s218_s24 = int_to_ptr.hbm [resolvable:$true] %s217_s24 }
  0x30   : > { %s219_s2 = sshll.u32 %s211_s7, 4  ;;  %s208_s12 = scalar_lea.sflag [#allocation9], %s847_s14  ;;  %s220_s2 = int_to_ptr.vmem [resolvable:$true] %s219_s2 }
  0x31   : > { %s643_s26 = sshra.s32 %s218_s24, 4  ;;  %s650_s27 = scalar_lea.hbm %s962_s3, 16  ;;  %s644_s26 = int_to_ptr.hbm [resolvable:$true] %s643_s26 }
  0x32   : > { %s645_s11 = scalar_lea.hbm %s644_s26, 8  ;;  %p651_p5 = scmp.lt.s32.totalorder %s644_s26, %s962_s3 }
  0x33   : > { %p646_p8 = scmp.ne.s32.totalorder %s644_s26, %s645_s11  ;;  %p652_p13 = scmp.lt.s32.totalorder %s650_s27, %s645_s11 }
  0x35   : > { %p648_p10 = pnand %p646_p8, %p617_p9  ;;  %p653_p0 = por %p652_p13, %p651_p5 }
  0x37   : > { %p649_p11 = pneg %p648_p10 }
  0x39   : > { %p654_p2 = pnand %p653_p0, %p649_p11 }
  0x3b   : > { %657 = shalt.err (!%p654_p2)
}
  0x3c   : > { %504 = dma.hbm_to_vmem [thread:$0]  (!%p864_p7), %s218_s24, 128, %s220_s2, %s208_s12  }
  0x3d   : > { %228 = sbr.rel (%p807_p3) target bundleno = 236 (0xec), region = 36  ;;  %s900_s14 = sand.u32 (!%p807_p3), 1, %s739_s16  }
  0x3e   : > { %s903_s21 = sshll.u32 (!%p807_p3), %s900_s14, 3  ;;  %s231_s30 = scalar_lea.sflag (!%p807_p3), [#allocation3], %s900_s14 }
  0x3f   : > { %s234_s11 = scalar_lea.vmem (!%p807_p3), [#allocation2], %s903_s21 }
  0x42   : > { %718 = dma.done.wait (%p840_p12), %s231_s30, 128  }
  0x43   : > { %720 = vsyncadd (%p840_p12), %s231_s30, 4294967168 }
  0x44   : > { %722 = dma.done.wait (%p45_p1), [#allocation6], 2080  }
  0x45   : > { %724 = vsyncadd (%p45_p1), [#allocation6], 4294965216  ;;  %s251_s2 = scalar_lea.sflag [#allocation9], %s900_s14  ;;  %s254_s23 = scalar_lea.vmem [#allocation8], %s903_s21 }
  0x46   : > { %726 = dma.done.wait (%p840_p12), %s251_s2, 128  }
  0x47   : > { %728 = vsyncadd (%p840_p12), %s251_s2, 4294967168  ;;  %v301_v0 = vld [vmem:[#allocation5 + $0x78] sm:$0xff]  ;;  %v300_v1 = vld [vmem:[#allocation5 + $0x70] sm:$0xff]  ;;  %s474_s13 = sshll.u32 %s802_s22, 3  ;;  %s284_s6 = scalar_lea.vmem [#allocation10], %s903_s21 }
  0x48   : > { %305 = vmatpush.msra.mxu0 %v301_v0  ;;  %v299_v2 = vld [vmem:[#allocation5 + $0x68] sm:$0xff]  ;;  %v298_v3 = vld [vmem:[#allocation5 + $0x60] sm:$0xff]  ;;  %v297_v4 = vld [vmem:[#allocation5 + $0x58] sm:$0xff]  ;;  %s341_s10 = scalar_lea.hbm %s963_s4, %s474_s13  ;;  %s343_s24 = sshll.u32 %s284_s6, 4  ;;  %s344_s24 = int_to_ptr.vmem [resolvable:$true] %s343_s24 }
  0x49   : > { %v296_v5 = vld [vmem:[#allocation5 + $0x50] sm:$0xff]  ;;  %v295_v6 = vld [vmem:[#allocation5 + $0x48] sm:$0xff]  ;;  %v294_v7 = vld [vmem:[#allocation5 + $0x40] sm:$0xff]  ;;  %s345_s7 = sshll.u32 %s341_s10, 4  ;;  %s331_s22 = scalar_lea.sflag [#allocation4], %s900_s14  ;;  %s346_s7 = int_to_ptr.hbm [resolvable:$true] %s345_s7 }
  0x4a   : > { %306 = vmatpush.msra.mxu0 %v300_v1  ;;  %v293_v8 = vld [vmem:[#allocation5 + $0x38] sm:$0xff]  ;;  %v292_v9 = vld [vmem:[#allocation5 + $0x30] sm:$0xff]  ;;  %v291_v10 = vld [vmem:[#allocation5 + $0x28] sm:$0xff]  ;;  %s687_s12 = sshra.s32 %s346_s7, 4  ;;  %s693_s27 = scalar_lea.hbm %s963_s4, 16  ;;  %s688_s12 = int_to_ptr.hbm [resolvable:$true] %s687_s12 }
  0x4b   : > { %v290_v11 = vld [vmem:[#allocation5 + $0x20] sm:$0xff]  ;;  %v289_v12 = vld [vmem:[#allocation5 + $0x18] sm:$0xff]  ;;  %v288_v13 = vld [vmem:[#allocation5 + $0x10] sm:$0xff]  ;;  %s689_s26 = scalar_lea.hbm %s688_s12, 8  ;;  %p694_p7 = scmp.lt.s32.totalorder %s688_s12, %s963_s4 }
  0x4c   : > { %307 = vmatpush.msra.mxu0 %v299_v2  ;;  %v287_v14 = vld [vmem:[#allocation5 + $0x8] sm:$0xff]  ;;  %v286_v15 = vld [vmem:[#allocation5] sm:$0xff]  ;;  %v285_v16 = vld [vmem:[%s234_s11] sm:$0xff]  ;;  %p690_p1 = scmp.ne.s32.totalorder %s688_s12, %s689_s26  ;;  %p695_p9 = scmp.lt.s32.totalorder %s693_s27, %s689_s26 }
  0x4d   : > { %v552_v17 = vld [vmem:[#allocation7 + $0x1] ss:$0 sm:$0xff]  ;;  %v325_v18 = vld [vmem:[%s254_s23] sm:$0xff]  ;;  %v551_v19 = vld [vmem:[#allocation7] ss:$0 sm:$0xff] }
  0x4e   : > { %308 = vmatpush.msra.mxu0 %v298_v3  ;;  %v327_v20 = vmul.f32 %v552_v17, %v325_v18  ;;  %p691_p3 = pnand %p690_p1, %p849_p4  ;;  %p696_p8 = por %p695_p9, %p694_p7 }
  0x50   : > { %309 = vmatpush.msra.mxu0 %v297_v4  ;;  %p692_p12 = pneg %p691_p3 }
  0x52   : > { %310 = vmatpush.msra.mxu0 %v296_v5  ;;  %p697_p10 = pnand %p696_p8, %p692_p12 }
  0x54   : > { %311 = vmatpush.msra.mxu0 %v295_v6 }
  0x56   : > { %312 = vmatpush.msra.mxu0 %v294_v7 }
  0x58   : > { %313 = vmatpush.msra.mxu0 %v293_v8 }
  0x5a   : > { %314 = vmatpush.msra.mxu0 %v292_v9 }
  0x5c   : > { %315 = vmatpush.msra.mxu0 %v291_v10 }
  0x5e   : > { %316 = vmatpush.msra.mxu0 %v290_v11 }
  0x60   : > { %317 = vmatpush.msra.mxu0 %v289_v12 }
  0x62   : > { %318 = vmatpush.msra.mxu0 %v288_v13 }
  0x64   : > { %319 = vmatpush.msra.mxu0 %v287_v14 }
  0x66   : > { %320 = vmatpush.msra.mxu0 %v286_v15 }
  0x67   : > { %321 = vmatmul.f32.vlgmr.msra.gmra.mxu0 %v285_v16 }
  0xe4   : > { %v322_v21 = vpop.f32.mrf.mxu0 }
  0xe5   : > { %v323_v22 = vadd.f32 %v551_v19, %v322_v21 }
  0xe7   : > { %v328_v23 = vadd.f32 %v327_v20, %v323_v22 }
  0xe9   : > { %329 = vst [vmem:[%s284_s6] sm:$0xff] %v328_v23 }
  0xea   : > { %700 = shalt.err (!%p697_p10)
}
  0xeb   : > { %489 = dma.vmem_to_hbm [thread:$0]  (%p849_p4), %s344_s24, 128, %s346_s7, %s331_s22  }
  0xec PF: > { %s357_s14 = sand.u32 1, %s735_s15   ;;  %p975_p11 = scmp.ge.s32.totalorder %s747_s18, 2 }
  0xed   : > { %s358_s21 = scalar_lea.sflag [#allocation4], %s357_s14 }
  0xee   : > { %p506_p5 = pnand %p975_p11, %p853_p6 }
  0xf0   : > { %p507_p13 = pneg %p506_p5 }
  0xf2   : > { %730 = dma.done.wait (%p507_p13), %s358_s21, 128  }
  0xf3   : > { %732 = vsyncadd (%p507_p13), %s358_s21, 4294967168  ;;  %s976_s30 = sld [smem:[#allocation15_spill]]  ;;  %p21_p0 = scmp.ge.s32.totalorder %s821_s8, 4  }
  0xf4   : > { %s977_s15 = smov %s739_s16  ;;  %s978_s16 = smov %s743_s17 }
  0xf5   : > { %s980_s18 = smov %s821_s8  ;;  %23 = sbr.rel (!%p21_p0) target bundleno = 11 (0xb), region = 102 }
  0xf9   : > { %s979_s17 = smov %s976_s30 }
  0xfa   :  { %364 = vsyncpa [#allocation3], 1 }
  0xfb   :  { %366 = vsyncpa [#allocation3 + $0x1], 1 }
  0xfc   :  { %367 = vsyncpa [#allocation6], 1 }
  0xfd   :  { %368 = vsyncpa [#allocation9], 1 }
  0xfe   :  { %370 = vsyncpa [#allocation9 + $0x1], 1 }
  0xff   :  { %371 = vsyncpa [#allocation4], 1 }
 0x100   :  { %373 = vsyncpa [#allocation4 + $0x1], 1 }

</bundles_post_ra>
